<compile_context>
chip_gen: v5e
topology: v5e:2x2
jax: 0.10.0
libtpu: 0.0.40
codegen_flags: <defaults>
</compile_context>

<pallas_src>
import numpy as np
import jax
import jax.numpy as jnp
from jax import lax
from jax.experimental import pallas as pl
from jax.experimental.pallas import tpu as pltpu  # noqa: F401  (TPU tuning hooks)

# ---------------- synthetic Config (shapes implied by the module) -------------
WORD_DIM = 32                 # word_vec_dim == vectorLength == wordVectorLength
ENT_DIM = 32                  # kg_vec_dim (must equal WORD_DIM for torch.mm)
CONV_DIM = 32                 # convolution_dim
CLASS_NUM = 2                 # class_number
KERNEL_SIZES = (3, 4, 5)      # kernel_size (odd/even alternation matches i%2 rule)
SEN_LEN = 8                   # senlength for the example
NK = len(KERNEL_SIZES)
KMAX = max(KERNEL_SIZES)      # 5
PAD = (KMAX - 1) // 2         # symmetric zero pad applied to x (=2)

NB = 2 * NK                   # 6 gated branches: chem k0..k2, dis k0..k2
KD = KMAX * WORD_DIM          # 160 im2col rows
AUG = KD + 2 * ENT_DIM + 1    # 225 im2col + e1 + e2 + ones(bias) rows
AUG_PAD = 256                 # padded contraction dim (2 x 128 lanes)
NBC = NB * CONV_DIM           # 192 stacked gated-feature lanes
NBE = NB * ENT_DIM            # 192 stacked attention lanes
NOUT = 2 * NBC                # 384 fused-conv output lanes (tanh | gate)
E1_ROW, E2_ROW, BIAS_ROW = KD, KD + ENT_DIM, KD + 2 * ENT_DIM   # 160, 192, 224
SOFTB_COL = 128               # lane-aligned column for the softmax bias in misc


# ------------------------------- Pallas kernel --------------------------------
def kr_ere_kernel(xaug_ref, reltile_ref, wconv_ref, attwbd_ref, misc_ref,
                  linw_ref, softw_ref, out_ref):
    # misc slab (8, 256) f32:
    #   rows 0:6  cols 0:192 -> 0/1 branch expander  (expT[b, b*32:(b+1)*32] = 1)
    #   row  6    cols 0:192 -> attention_b tiled x6 (lane-major)
    #   row  7    cols 0:32  -> LinearLayer_b ; cols 128:130 -> softmaxLayer_b
    misc = misc_ref[...]
    expT = misc[0:NB, 0:NBC]                              # (6, 192)
    attb = misc[NB:NB + 1, 0:NBE]                         # (1, 192)
    linb = misc[NB + 1:NB + 2, 0:CONV_DIM]                # (1, 32)
    softb = misc[NB + 1:NB + 2, SOFTB_COL:SOFTB_COL + CLASS_NUM]   # (1, 2)

    # One fused MXU matmul: all 12 Conv1d's, both entity projections and every
    # conv/entity bias (via the ones column of xaug).  Lane-dense output:
    #   cols [  0:192] -> tanh branches  (convstc k0..k2, convstd k0..k2)
    #   cols [192:384] -> gate branches  (convsc+E1 k0..k2, convsd+E2 k0..k2)
    Y = jnp.dot(xaug_ref[...], wconv_ref[...],
                preferred_element_type=jnp.float32)       # (8, 384) f32

    # Gated features, lane order = LinearLayer_W column order.
    H = jnp.tanh(Y[:, :NBC]) * jnp.maximum(Y[:, NBC:], 0.0)          # (8, 192)

    # Batched relation attention for all 6 branches at once (block-diagonal
    # attention_W^T, bf16 weights / f32 accumulate).
    U = jnp.tanh(jnp.dot(H.astype(jnp.bfloat16), attwbd_ref[...],
                         preferred_element_type=jnp.float32) + attb)  # (8, 192)

    # Per-branch scores S[p, b] = sum_e rel[e] * U[p, b*32+e]: multiply by the
    # pre-tiled relation row and contract the 32-lane blocks with the 0/1
    # expander (trans-B contraction, no relayout of U).
    dn = (((1,), (1,)), ((), ()))
    S = lax.dot_general(U * reltile_ref[...], expT, dn,
                        preferred_element_type=jnp.float32)           # (8, 6)

    # Softmax over the 8 sentence positions (sublane axis).
    S = S - jnp.max(S, axis=0, keepdims=True)
    Ez = jnp.exp(S)
    A = Ez / jnp.sum(Ez, axis=0, keepdims=True)                       # (8, 6)

    # Expand per-branch attention back to per-channel lanes with a tiny 0/1
    # matmul (host-built constant, no iota/repeat), then pool over positions.
    Arep = jnp.dot(A, expT, preferred_element_type=jnp.float32)       # (8, 192)
    P = jnp.sum(H * Arep, axis=0, keepdims=True)                      # (1, 192)

    # TODO(synk): train-mode dropout(p=0.5) on contxtWords0 omitted (eval
    # identity); reproducing it needs pltpu.prng_seed/prng_random_bits.
    lin = jnp.maximum(
        lax.dot_general(P, linw_ref[...], dn,
                        preferred_element_type=jnp.float32) + linb, 0.0)   # (1, 32)
    out_ref[...] = lax.dot_general(lin, softw_ref[...], dn,
                                   preferred_element_type=jnp.float32) + softb   # (1, 2)


# ------------------------------ wrapper / glue ---------------------------------
@jax.jit
def kr_ere_forward(x, e1, e2, rel, packed):
    wconv, attwbd, misc, linw, softw = packed

    # im2col in the transposed (position-major) frame: xaug[p, t*32+d] = xpad[d, p+t]
    xT = x.T                                                   # (L, D)
    xpadT = jnp.pad(xT, ((PAD, PAD), (0, 0)))                  # (L+4, D)
    taps = [xpadT[t:t + SEN_LEN, :] for t in range(KMAX)]      # 5 x (L, D)
    xaug = jnp.concatenate(
        taps + [jnp.broadcast_to(e1.T, (SEN_LEN, ENT_DIM)),
                jnp.broadcast_to(e2.T, (SEN_LEN, ENT_DIM)),
                jnp.ones((SEN_LEN, 1), jnp.float32),
                jnp.zeros((SEN_LEN, AUG_PAD - AUG), jnp.float32)],
        axis=1).astype(jnp.bfloat16)                           # (8, 256) bf16

    rel_tiled = jnp.tile(rel, (1, NB))                         # (1, 192) f32

    # Single-step kernel: no grid, whole arrays resident in VMEM (defaults) —
    # avoids per-grid-step pipeline overhead; total footprint is < 1 MiB so it
    # fits v5e/v6e/v7x VMEM trivially.
    out = pl.pallas_call(
        kr_ere_kernel,
        out_shape=jax.ShapeDtypeStruct((1, CLASS_NUM), jnp.float32),
    )(xaug, rel_tiled, wconv, attwbd, misc, linw, softw)
    return out.T                                               # (CLASS_NUM, 1), module layout


# --------------------------- deterministic parameters ---------------------------
def build_params():
    rs = np.random.RandomState(1234)

    def u(shape):
        return rs.uniform(-0.01, 0.01, shape).astype(np.float32)

    def conv_group():
        ws = [u((CONV_DIM, WORD_DIM, K)) for K in KERNEL_SIZES]   # torch (C, D, K)
        bs = [u((CONV_DIM,)) for _ in KERNEL_SIZES]
        return ws, bs

    convstc = conv_group()
    convsc = conv_group()
    convstd = conv_group()
    convsd = conv_group()

    chemical_W, chemical_b = u((CONV_DIM, ENT_DIM)), u((CONV_DIM, 1))
    disease_W, disease_b = u((CONV_DIM, ENT_DIM)), u((CONV_DIM, 1))
    LinearLayer_W = u((CONV_DIM, CONV_DIM * 2 * NK))
    LinearLayer_b = u((CONV_DIM, 1))
    attention_W, attention_b = u((ENT_DIM, CONV_DIM)), u((ENT_DIM, 1))
    softmaxLayer_W, softmaxLayer_b = u((CLASS_NUM, CONV_DIM)), u((CLASS_NUM, 1))

    # ---- fused conv / entity / bias slab, transposed & K-padded: (256, 384) ----
    Wconv = np.zeros((AUG_PAD, NOUT), np.float32)

    def put(col_base, ws, bs, ent_w=None, ent_b=None, ent_row=None):
        for i, (K, w, b) in enumerate(zip(KERNEL_SIZES, ws, bs)):
            c0 = col_base + i * CONV_DIM
            shift = PAD - (K - 1) // 2        # align taps into the global PAD frame
            for tt in range(K):
                r0 = (shift + tt) * WORD_DIM
                Wconv[r0:r0 + WORD_DIM, c0:c0 + CONV_DIM] = w[:, :, tt].T
            Wconv[BIAS_ROW, c0:c0 + CONV_DIM] = b
            if ent_w is not None:             # fold entity projection + bias
                Wconv[ent_row:ent_row + ENT_DIM, c0:c0 + CONV_DIM] = ent_w.T
                Wconv[BIAS_ROW, c0:c0 + CONV_DIM] += ent_b[:, 0]

    put(0, *convstc)                                                               # tanh, chem
    put(NK * CONV_DIM, *convstd)                                                   # tanh, dis
    put(NBC, *convsc, ent_w=chemical_W, ent_b=chemical_b, ent_row=E1_ROW)          # gate, chem
    put(NBC + NK * CONV_DIM, *convsd, ent_w=disease_W, ent_b=disease_b, ent_row=E2_ROW)  # gate, dis

    # ---- block-diagonal attention weight (attention_W^T in each 32x32 block) ----
    attWbdT = np.zeros((NBC, NBE), np.float32)
    for b in range(NB):
        attWbdT[b * CONV_DIM:(b + 1) * CONV_DIM, b * ENT_DIM:(b + 1) * ENT_DIM] = attention_W.T

    # ---- misc slab (8, 256): expander rows 0:6, attn bias row 6, lin/soft bias row 7 ----
    misc = np.zeros((8, AUG_PAD), np.float32)
    for b in range(NB):
        misc[b, b * CONV_DIM:(b + 1) * CONV_DIM] = 1.0
    misc[NB, 0:NBE] = np.tile(attention_b[:, 0], NB)
    misc[NB + 1, 0:CONV_DIM] = LinearLayer_b[:, 0]
    misc[NB + 1, SOFTB_COL:SOFTB_COL + CLASS_NUM] = softmaxLayer_b[:, 0]

    packed = (jnp.asarray(Wconv, dtype=jnp.bfloat16),      # (256, 384) bf16
              jnp.asarray(attWbdT, dtype=jnp.bfloat16),    # (192, 192) bf16
              jnp.asarray(misc),                           # (8, 256)   f32
              jnp.asarray(LinearLayer_W),                  # (32, 192)  f32 (lane-major)
              jnp.asarray(softmaxLayer_W))                 # (2, 32)    f32
    raw = dict(convs=(convstc, convsc, convstd, convsd),
               dense=(chemical_W, chemical_b, disease_W, disease_b,
                      attention_W, attention_b, LinearLayer_W, LinearLayer_b,
                      softmaxLayer_W, softmaxLayer_b))
    return packed, raw


# ---------------------------- pure-JAX reference --------------------------------
def ref_forward(x, e1, e2, rel, raw):
    chemW, chemb, disW, disb, attW, attb, linW, linb, softW, softb = [
        jnp.asarray(a) for a in raw['dense']]
    convstc, convsc, convstd, convsd = raw['convs']

    E1 = chemW @ e1 + chemb
    E2 = disW @ e2 + disb

    def run_conv(w, b, i, K):
        xin = x[None]                                           # (1, D, L)
        if i % 2:                                               # module's even-K trick
            xin = jnp.concatenate([xin, jnp.zeros((1, WORD_DIM, 1), jnp.float32)], 2)
        pad = (K - 1) // 2
        y = lax.conv_general_dilated(xin, jnp.asarray(w), (1,), [(pad, pad)],
                                     dimension_numbers=('NCH', 'OIH', 'NCH'))
        return y[0] + jnp.asarray(b)[:, None]

    pooled_chem, pooled_dis = [], []
    for i, K in enumerate(KERNEL_SIZES):
        h_chem = jnp.tanh(run_conv(convstc[0][i], convstc[1][i], i, K)) * \
            jax.nn.relu(run_conv(convsc[0][i], convsc[1][i], i, K) + E1)
        h_dis = jnp.tanh(run_conv(convstd[0][i], convstd[1][i], i, K)) * \
            jax.nn.relu(run_conv(convsd[0][i], convsd[1][i], i, K) + E2)
        for h, lst in ((h_chem, pooled_chem), (h_dis, pooled_dis)):
            att = jax.nn.softmax(rel @ jnp.tanh(attW @ h + attb), axis=1)
            lst.append((att @ h.T).reshape(CONV_DIM, 1))
    v = jnp.concatenate(pooled_chem + pooled_dis, axis=0)
    lin = jax.nn.relu(linW @ v + linb)
    return softW @ lin + softb


# ------------------------------------ main ---------------------------------------
if __name__ == "__main__":
    key = jax.random.PRNGKey(0)
    k1, k2, k3, k4 = jax.random.split(key, 4)
    x = jax.random.normal(k1, (WORD_DIM, SEN_LEN), jnp.float32)      # contxtWords (D, L)
    e1 = jax.random.normal(k2, (WORD_DIM, 1), jnp.float32)
    e2 = jax.random.normal(k3, (WORD_DIM, 1), jnp.float32)
    rel = jax.random.normal(k4, (1, ENT_DIM), jnp.float32)

    packed, raw = build_params()

    out = jax.block_until_ready(kr_ere_forward(x, e1, e2, rel, packed))
    ref = jax.block_until_ready(ref_forward(x, e1, e2, rel, raw))
    np.testing.assert_allclose(np.asarray(out), np.asarray(ref), rtol=1e-4, atol=1e-4)

    print("KERNEL_OK")
</pallas_src>

<mosaic_0001>
module attributes {stable_mosaic.version = 11 : i64} {
  func.func @kr_ere_kernel(%arg0: memref<8x256xbf16, #tpu.memory_space<vmem>>, %arg1: memref<1x192xf32, #tpu.memory_space<vmem>>, %arg2: memref<256x384xbf16, #tpu.memory_space<vmem>>, %arg3: memref<192x192xbf16, #tpu.memory_space<vmem>>, %arg4: memref<8x256xf32, #tpu.memory_space<vmem>>, %arg5: memref<32x192xf32, #tpu.memory_space<vmem>>, %arg6: memref<2x32xf32, #tpu.memory_space<vmem>>, %arg7: memref<1x2xf32, #tpu.memory_space<vmem>>) attributes {dimension_semantics = [], scalar_prefetch = 0 : i64, scratch_operands = 0 : i64, tpu.core_type = #tpu.core_type<tc>} {
    %c0 = arith.constant 0 : index
    %c0_0 = arith.constant 0 : index
    %0 = vector.load %arg4[%c0, %c0_0] : memref<8x256xf32, #tpu.memory_space<vmem>>, vector<8x256xf32>
    %1 = vector.extract_strided_slice %0 {offsets = [0, 0], sizes = [6, 192], strides = [1, 1]} : vector<8x256xf32> to vector<6x192xf32>
    %2 = vector.extract_strided_slice %0 {offsets = [6, 0], sizes = [1, 192], strides = [1, 1]} : vector<8x256xf32> to vector<1x192xf32>
    %3 = vector.extract_strided_slice %0 {offsets = [7, 0], sizes = [1, 32], strides = [1, 1]} : vector<8x256xf32> to vector<1x32xf32>
    %4 = vector.extract_strided_slice %0 {offsets = [7, 128], sizes = [1, 2], strides = [1, 1]} : vector<8x256xf32> to vector<1x2xf32>
    %c0_1 = arith.constant 0 : index
    %c0_2 = arith.constant 0 : index
    %5 = vector.load %arg0[%c0_1, %c0_2] : memref<8x256xbf16, #tpu.memory_space<vmem>>, vector<8x256xbf16>
    %c0_3 = arith.constant 0 : index
    %c0_4 = arith.constant 0 : index
    %6 = vector.load %arg2[%c0_3, %c0_4] : memref<256x384xbf16, #tpu.memory_space<vmem>>, vector<256x384xbf16>
    %cst = arith.constant dense<0.000000e+00> : vector<8x384xf32>
    %7 = tpu.matmul %5, %6, %cst {dimension_numbers = #tpu.dot_dimension_numbers<[1], [0], [0], [1], [0, 0, 1, 1], [], []>} : vector<8x256xbf16>, vector<256x384xbf16>, vector<8x384xf32> -> vector<8x384xf32>
    %8 = vector.extract_strided_slice %7 {offsets = [0, 0], sizes = [8, 192], strides = [1, 1]} : vector<8x384xf32> to vector<8x192xf32>
    %9 = math.tanh %8 : vector<8x192xf32>
    %10 = vector.extract_strided_slice %7 {offsets = [0, 192], sizes = [8, 192], strides = [1, 1]} : vector<8x384xf32> to vector<8x192xf32>
    %cst_5 = arith.constant 0.000000e+00 : f32
    %11 = vector.broadcast %cst_5 : f32 to vector<8x192xf32>
    %12 = arith.maximumf %10, %11 : vector<8x192xf32>
    %13 = arith.mulf %9, %12 : vector<8x192xf32>
    %14 = arith.truncf %13 : vector<8x192xf32> to vector<8x192xbf16>
    %c0_6 = arith.constant 0 : index
    %c0_7 = arith.constant 0 : index
    %15 = vector.load %arg3[%c0_6, %c0_7] : memref<192x192xbf16, #tpu.memory_space<vmem>>, vector<192x192xbf16>
    %cst_8 = arith.constant dense<0.000000e+00> : vector<8x192xf32>
    %16 = tpu.matmul %14, %15, %cst_8 {dimension_numbers = #tpu.dot_dimension_numbers<[1], [0], [0], [1], [0, 0, 1, 1], [], []>} : vector<8x192xbf16>, vector<192x192xbf16>, vector<8x192xf32> -> vector<8x192xf32>
    %17 = vector.broadcast %2 : vector<1x192xf32> to vector<8x192xf32>
    %18 = arith.addf %16, %17 : vector<8x192xf32>
    %19 = math.tanh %18 : vector<8x192xf32>
    %c0_9 = arith.constant 0 : index
    %c0_10 = arith.constant 0 : index
    %20 = vector.load %arg1[%c0_9, %c0_10] : memref<1x192xf32, #tpu.memory_space<vmem>>, vector<1x192xf32>
    %21 = vector.broadcast %20 : vector<1x192xf32> to vector<8x192xf32>
    %22 = arith.mulf %19, %21 : vector<8x192xf32>
    %cst_11 = arith.constant dense<0.000000e+00> : vector<8x6xf32>
    %23 = tpu.matmul %22, %1, %cst_11 {dimension_numbers = #tpu.dot_dimension_numbers<[1], [1], [0], [0], [0, 0, 1, 0], [], []>} : vector<8x192xf32>, vector<6x192xf32>, vector<8x6xf32> -> vector<8x6xf32>
    %cst_12 = arith.constant dense<0xFF800000> : vector<6xf32>
    %24 = vector.multi_reduction <maximumf>, %23, %cst_12 [0] : vector<8x6xf32> to vector<6xf32>
    %25 = vector.shape_cast %24 : vector<6xf32> to vector<1x6xf32>
    %26 = vector.broadcast %25 : vector<1x6xf32> to vector<8x6xf32>
    %27 = arith.subf %23, %26 : vector<8x6xf32>
    %28 = math.exp %27 : vector<8x6xf32>
    %cst_13 = arith.constant dense<0.000000e+00> : vector<6xf32>
    %29 = vector.multi_reduction <add>, %28, %cst_13 [0] : vector<8x6xf32> to vector<6xf32>
    %30 = vector.shape_cast %29 : vector<6xf32> to vector<1x6xf32>
    %31 = vector.broadcast %30 : vector<1x6xf32> to vector<8x6xf32>
    %32 = arith.divf %28, %31 : vector<8x6xf32>
    %cst_14 = arith.constant dense<0.000000e+00> : vector<8x192xf32>
    %33 = tpu.matmul %32, %1, %cst_14 {dimension_numbers = #tpu.dot_dimension_numbers<[1], [0], [0], [1], [0, 0, 1, 1], [], []>} : vector<8x6xf32>, vector<6x192xf32>, vector<8x192xf32> -> vector<8x192xf32>
    %34 = arith.mulf %13, %33 : vector<8x192xf32>
    %cst_15 = arith.constant dense<0.000000e+00> : vector<192xf32>
    %35 = vector.multi_reduction <add>, %34, %cst_15 [0] : vector<8x192xf32> to vector<192xf32>
    %36 = vector.shape_cast %35 : vector<192xf32> to vector<1x192xf32>
    %c0_16 = arith.constant 0 : index
    %c0_17 = arith.constant 0 : index
    %37 = vector.load %arg5[%c0_16, %c0_17] : memref<32x192xf32, #tpu.memory_space<vmem>>, vector<32x192xf32>
    %cst_18 = arith.constant dense<0.000000e+00> : vector<1x32xf32>
    %38 = tpu.matmul %36, %37, %cst_18 {dimension_numbers = #tpu.dot_dimension_numbers<[1], [1], [0], [0], [0, 0, 1, 0], [], []>} : vector<1x192xf32>, vector<32x192xf32>, vector<1x32xf32> -> vector<1x32xf32>
    %39 = arith.addf %38, %3 : vector<1x32xf32>
    %cst_19 = arith.constant 0.000000e+00 : f32
    %40 = vector.broadcast %cst_19 : f32 to vector<1x32xf32>
    %41 = arith.maximumf %39, %40 : vector<1x32xf32>
    %c0_20 = arith.constant 0 : index
    %c0_21 = arith.constant 0 : index
    %42 = vector.load %arg6[%c0_20, %c0_21] : memref<2x32xf32, #tpu.memory_space<vmem>>, vector<2x32xf32>
    %cst_22 = arith.constant dense<0.000000e+00> : vector<1x2xf32>
    %43 = tpu.matmul %41, %42, %cst_22 {dimension_numbers = #tpu.dot_dimension_numbers<[1], [1], [0], [0], [0, 0, 1, 0], [], []>} : vector<1x32xf32>, vector<2x32xf32>, vector<1x2xf32> -> vector<1x2xf32>
    %44 = arith.addf %43, %4 : vector<1x2xf32>
    %c0_23 = arith.constant 0 : index
    %c0_24 = arith.constant 0 : index
    %45 = vector.load %arg7[%c0_23, %c0_24] : memref<1x2xf32, #tpu.memory_space<vmem>>, vector<1x2xf32>
    tpu.vector_store %arg7[%c0_23, %c0_24], %44 {strides = array<i32>} : memref<1x2xf32, #tpu.memory_space<vmem>>, vector<1x2xf32>,
    return
  }
}

</mosaic_0001>

<bundles_post_ra>
// kernel: kr_ere_forward.1
= control target key start
LH: loop header
LB: loop body
LE: loop exit
PB: predicated region body
PF: predicated region fallthrough
CT: control target
= control target key end

     0   :  { %12 = vsyncpa [#allocation3], 0  ;;  %s1575_s0 = inlined_call_operand.vmem [shape: bf16[8,256], index: 0, kind: input, shape index: {}]   ;;  %s1576_s1 = inlined_call_operand.vmem [shape: f32[1,192], index: 1, kind: input, shape index: {}]   ;;  %s1577_s2 = inlined_call_operand.hbm [shape: bf16[256,384], index: 2, kind: input, shape index: {}]   ;;  %s1578_s3 = inlined_call_operand.hbm [shape: bf16[192,192], index: 3, kind: input, shape index: {}]   ;;  %s1579_s4 = inlined_call_operand.vmem [shape: f32[8,256], index: 4, kind: input, shape index: {}]   ;;  %s1580_s5 = inlined_call_operand.vmem [shape: f32[32,192], index: 5, kind: input, shape index: {}]   ;;  %s1581_s6 = inlined_call_operand.vmem [shape: f32[2,32], index: 6, kind: input, shape index: {}]   ;;  %s1582_s7 = inlined_call_operand.hbm [shape: f32[1,2], index: 7, kind: output, shape index: {}]  }
   0x1   :  { %13 = vsyncpa [#allocation6], 0 }
   0x2   :  { %14 = vsyncpa [#allocation4], 0  ;;  %s23_s26 = sshll.u32 %s1577_s2, 4  ;;  %s1429_s27 = smov [#allocation2]   ;;  %s24_s26 = int_to_ptr.hbm [resolvable:$true] %s23_s26 }
   0x3   :  { %s25_s28 = sshll.u32 %s1429_s27, 4  ;;  %s36_s8 = sshll.u32 %s1578_s3, 4  ;;  %s26_s28 = int_to_ptr.vmem [resolvable:$true] %s25_s28  ;;  %s37_s8 = int_to_ptr.hbm [resolvable:$true] %s36_s8 }
   0x4   :  { %s1430_s9 = smov 192   ;;  %s1431_s10 = smov 12  }
   0x5   :  { %31 = dma.hbm_to_vmem [thread:$0]  %s24_s26, 6144, %s26_s28, [#allocation3], %s1430_s9, %s1430_s9, %s1431_s10  }
   0x6   :  { %s1432_s11 = smov [#allocation5]   ;;  %s1433_s13 = smov 128  }
   0x7   :  { %s38_s12 = sshll.u32 %s1432_s11, 4  ;;  %s1434_s14 = smov 8   ;;  %s39_s12 = int_to_ptr.vmem [resolvable:$true] %s38_s12 }
   0x8   :  { %44 = dma.hbm_to_vmem [thread:$0]  %s37_s8, 3072, %s39_s12, [#allocation6], %s1433_s13, %s1433_s13, %s1434_s14  }
   0x9   :  { %1423 = dma.done.wait [#allocation3], 6144  }
   0xa   :  { %1424 = vsyncadd [#allocation3], 4294961152 }
   0xb   :  { %1425 = dma.done.wait [#allocation6], 3072  }
   0xc   :  { %1426 = vsyncadd [#allocation6], 4294964224  ;;  %v1042_v0 = vld [vmem:[#allocation2 + $0xa8] sm:$0xf]  ;;  %v1281_v1 = vld [vmem:[#allocation2 + $0xb0] sm:$0xf0] }
   0xd   :  { %v1138_v2 = vld [vmem:[#allocation2 + $0x168] sm:$0xf]  ;;  %v1043_v3 = vor.u32 %v1281_v1, %v1042_v0  ;;  %v1305_v4 = vld [vmem:[#allocation2 + $0x170] sm:$0xf0]  ;;  %v1030_v5 = vld [vmem:[#allocation2 + $0x90] sm:$0xf] }
   0xe   :  { %v1278_v6 = vld [vmem:[#allocation2 + $0x98] sm:$0xf0]  ;;  %v1139_v7 = vor.u32 %v1305_v4, %v1138_v2  ;;  %v1126_v8 = vld [vmem:[#allocation2 + $0x150] sm:$0xf]  ;;  %v1018_v12 = vld [vmem:[#allocation2 + $0x78] sm:$0xf] }
   0xf   :  { %v1302_v9 = vld [vmem:[#allocation2 + $0x158] sm:$0xf0]  ;;  %390 = vmatpush.bf16.msra.mxu0 %v1043_v3  ;;  %v1031_v10 = vor.u32 %v1278_v6, %v1030_v5  ;;  %v1275_v13 = vld [vmem:[#allocation2 + $0x80] sm:$0xf0]  ;;  %v1114_v14 = vld [vmem:[#allocation2 + $0x138] sm:$0xf] }
  0x10   :  { %403 = vmatpush.bf16.msra.mxu1 %v1139_v7  ;;  %v1127_v11 = vor.u32 %v1302_v9, %v1126_v8  ;;  %v1299_v15 = vld [vmem:[#allocation2 + $0x140] sm:$0xf0]  ;;  %v1019_v16 = vor.u32 %v1275_v13, %v1018_v12  ;;  %v1006_v18 = vld [vmem:[#allocation2 + $0x60] sm:$0xf]  ;;  %v1272_v19 = vld [vmem:[#allocation2 + $0x68] sm:$0xf0] }
  0x11   :  { %v1115_v17 = vor.u32 %v1299_v15, %v1114_v14  ;;  %v1102_v20 = vld [vmem:[#allocation2 + $0x120] sm:$0xf]  ;;  %v1296_v21 = vld [vmem:[#allocation2 + $0x128] sm:$0xf0]  ;;  %v1007_v22 = vor.u32 %v1272_v19, %v1006_v18  ;;  %v994_v23 = vld [vmem:[#allocation2 + $0x48] sm:$0xf] }
  0x12   :  { %v1269_v24 = vld [vmem:[#allocation2 + $0x50] sm:$0xf0]  ;;  %v1103_v25 = vor.u32 %v1296_v21, %v1102_v20  ;;  %v1280_v26 = vld [vmem:[#allocation2 + $0xac] sm:$0xf]  ;;  %v1044_v27 = vld [vmem:[#allocation2 + $0xb4] sm:$0xf0] }
  0x13   :  { %391 = vmatpush.bf16.msra.mxu0 %v1031_v10  ;;  %v1304_v28 = vld [vmem:[#allocation2 + $0x16c] sm:$0xf]  ;;  %v1090_v29 = vld [vmem:[#allocation2 + $0x108] sm:$0xf]  ;;  %v1293_v30 = vld [vmem:[#allocation2 + $0x110] sm:$0xf0]  ;;  %v1047_v31 = vor.u32 %v1280_v26, %v1044_v27  ;;  %v995_v35 = vor.u32 %v1269_v24, %v994_v23 }
  0x14   :  { %404 = vmatpush.bf16.msra.mxu1 %v1127_v11  ;;  %v1140_v32 = vld [vmem:[#allocation2 + $0x174] sm:$0xf0]  ;;  %v1277_v34 = vld [vmem:[#allocation2 + $0x94] sm:$0xf]  ;;  %v1032_v36 = vld [vmem:[#allocation2 + $0x9c] sm:$0xf0]  ;;  %v1091_v39 = vor.u32 %v1293_v30, %v1090_v29 }
  0x15   :  { %v1143_v33 = vor.u32 %v1304_v28, %v1140_v32  ;;  %416 = vmatpush.bf16.msra.mxu2 %v1047_v31  ;;  %v1301_v37 = vld [vmem:[#allocation2 + $0x154] sm:$0xf]  ;;  %v1128_v38 = vld [vmem:[#allocation2 + $0x15c] sm:$0xf0]  ;;  %v982_v40 = vld [vmem:[#allocation2 + $0x30] sm:$0xf]  ;;  %v1035_v42 = vor.u32 %v1277_v34, %v1032_v36 }
  0x16   :  { %v1266_v41 = vld [vmem:[#allocation2 + $0x38] sm:$0xf0]  ;;  %v1131_v43 = vor.u32 %v1301_v37, %v1128_v38  ;;  %v1078_v44 = vld [vmem:[#allocation2 + $0xf0] sm:$0xf]  ;;  %v1020_v47 = vld [vmem:[#allocation2 + $0x84] sm:$0xf0] }
  0x17   :  { %392 = vmatpush.bf16.msra.mxu0 %v1019_v16  ;;  %429 = vmatpush.bf16.msra.mxu3 %v1143_v33  ;;  %v1290_v45 = vld [vmem:[#allocation2 + $0xf8] sm:$0xf0]  ;;  %v1116_v49 = vld [vmem:[#allocation2 + $0x144] sm:$0xf0]  ;;  %v983_v50 = vor.u32 %v1266_v41, %v982_v40  ;;  %v970_v51 = vld [vmem:[#allocation2 + $0x18] sm:$0xf] }
  0x18   :  { %405 = vmatpush.bf16.msra.mxu1 %v1115_v17  ;;  %v1274_v46 = vld [vmem:[#allocation2 + $0x7c] sm:$0xf]  ;;  %v1263_v52 = vld [vmem:[#allocation2 + $0x20] sm:$0xf0]  ;;  %v1079_v54 = vor.u32 %v1290_v45, %v1078_v44  ;;  %v1066_v55 = vld [vmem:[#allocation2 + $0xd8] sm:$0xf] }
  0x19   :  { %v1298_v48 = vld [vmem:[#allocation2 + $0x13c] sm:$0xf]  ;;  %417 = vmatpush.bf16.msra.mxu2 %v1035_v42  ;;  %v1023_v53 = vor.u32 %v1274_v46, %v1020_v47  ;;  %v1271_v57 = vld [vmem:[#allocation2 + $0x64] sm:$0xf]  ;;  %v1008_v58 = vld [vmem:[#allocation2 + $0x6c] sm:$0xf0]  ;;  %v971_v63 = vor.u32 %v1263_v52, %v970_v51 }
  0x1a   :  { %v1119_v56 = vor.u32 %v1298_v48, %v1116_v49  ;;  %v1287_v59 = vld [vmem:[#allocation2 + $0xe0] sm:$0xf0]  ;;  %v1104_v61 = vld [vmem:[#allocation2 + $0x12c] sm:$0xf0]  ;;  %v958_v62 = vld [vmem:[#allocation2] sm:$0xf]  ;;  %v1011_v3 = vor.u32 %v1271_v57, %v1008_v58 }
  0x1b   :  { %393 = vmatpush.bf16.msra.mxu0 %v1007_v22  ;;  %430 = vmatpush.bf16.msra.mxu3 %v1131_v43  ;;  %v1295_v60 = vld [vmem:[#allocation2 + $0x124] sm:$0xf]  ;;  %v1260_v0 = vld [vmem:[#allocation2 + $0x8] sm:$0xf0]  ;;  %v1054_v1 = vld [vmem:[#allocation2 + $0xc0] sm:$0xf]  ;;  %v1067_v4 = vor.u32 %v1287_v59, %v1066_v55 }
  0x1c   :  { %406 = vmatpush.bf16.msra.mxu1 %v1103_v25  ;;  %v62_v2 = vld [vmem:[%s1575_s0] sm:$0xff]  ;;  %v1284_v5 = vld [vmem:[#allocation2 + $0xc8] sm:$0xf0]  ;;  %v1107_v6 = vor.u32 %v1295_v60, %v1104_v61  ;;  %v996_v8 = vld [vmem:[#allocation2 + $0x54] sm:$0xf0]  ;;  %v959_v16 = vor.u32 %v1260_v0, %v958_v62  ;;  %s1435_s0 = smov 64  }
  0x1d   :  { %418 = vmatpush.bf16.msra.mxu2 %v1023_v53  ;;  %v1268_v7 = vld [vmem:[#allocation2 + $0x4c] sm:$0xf]  ;;  %v1050_v9 = vld [vmem:[#allocation2 + $0xb0] sm:$0xf]  ;;  %v1282_v10 = vld [vmem:[#allocation2 + $0xb8] sm:$0xf0]  ;;  %v128_v13 = vunpack.c.l.b16 %v62_v2  ;;  %v129_v17 = vunpack.c.h.b16 %v62_v2  ;;  %v1055_v19 = vor.u32 %v1284_v5, %v1054_v1 }
  0x1e   :  { %v1146_v11 = vld [vmem:[#allocation2 + $0x170] sm:$0xf]  ;;  %v1306_v12 = vld [vmem:[#allocation2 + $0x178] sm:$0xf0]  ;;  %v1292_v14 = vld [vmem:[#allocation2 + $0x10c] sm:$0xf]  ;;  %v999_v18 = vor.u32 %v1268_v7, %v996_v8  ;;  %v1051_v20 = vor.u32 %v1282_v10, %v1050_v9 }
  0x1f   :  { %394 = vmatpush.bf16.msra.mxu0 %v995_v35  ;;  %431 = vmatpush.bf16.msra.mxu3 %v1119_v56  ;;  %v1092_v15 = vld [vmem:[#allocation2 + $0x114] sm:$0xf0]  ;;  %v1265_v21 = vld [vmem:[#allocation2 + $0x34] sm:$0xf]  ;;  %v984_v22 = vld [vmem:[#allocation2 + $0x3c] sm:$0xf0]  ;;  %v1147_v23 = vor.u32 %v1306_v12, %v1146_v11  ;;  %v1486_v29 = vpack.c.b16 %v128_v13, %v128_v13  ;;  %v1488_v32 = vpack.c.b16 %v129_v17, %v129_v17 }
  0x20   :  { %407 = vmatpush.bf16.msra.mxu1 %v1091_v39  ;;  %v1038_v24 = vld [vmem:[#allocation2 + $0x98] sm:$0xf]  ;;  %v1279_v25 = vld [vmem:[#allocation2 + $0xa0] sm:$0xf0]  ;;  %v1095_v27 = vor.u32 %v1292_v14, %v1092_v15  ;;  %v1289_v30 = vld [vmem:[#allocation2 + $0xf4] sm:$0xf]  ;;  %v987_v33 = vor.u32 %v1265_v21, %v984_v22 }
  0x21   :  { %419 = vmatpush.bf16.msra.mxu2 %v1011_v3  ;;  %v1134_v26 = vld [vmem:[#allocation2 + $0x158] sm:$0xf]  ;;  %v1303_v28 = vld [vmem:[#allocation2 + $0x160] sm:$0xf0]  ;;  %v1080_v31 = vld [vmem:[#allocation2 + $0xfc] sm:$0xf0]  ;;  %v1039_v34 = vor.u32 %v1279_v25, %v1038_v24 }
  0x22   :  { %v1262_v35 = vld [vmem:[#allocation2 + $0x1c] sm:$0xf]  ;;  %v972_v36 = vld [vmem:[#allocation2 + $0x24] sm:$0xf0]  ;;  %v1135_v37 = vor.u32 %v1303_v28, %v1134_v26  ;;  %v1026_v38 = vld [vmem:[#allocation2 + $0x80] sm:$0xf]  ;;  %v1083_v41 = vor.u32 %v1289_v30, %v1080_v31 }
  0x23   :  { %395 = vmatpush.bf16.msra.mxu0 %v983_v50  ;;  %432 = vmatpush.bf16.msra.mxu3 %v1107_v6  ;;  %v1276_v39 = vld [vmem:[#allocation2 + $0x88] sm:$0xf0]  ;;  %v1122_v40 = vld [vmem:[#allocation2 + $0x140] sm:$0xf]  ;;  %v1286_v43 = vld [vmem:[#allocation2 + $0xdc] sm:$0xf]  ;;  %v975_v45 = vor.u32 %v1262_v35, %v972_v36 }
  0x24   :  { %408 = vmatpush.bf16.msra.mxu1 %v1079_v54  ;;  %v1300_v42 = vld [vmem:[#allocation2 + $0x148] sm:$0xf0]  ;;  %v1068_v44 = vld [vmem:[#allocation2 + $0xe4] sm:$0xf0]  ;;  %v1027_v46 = vor.u32 %v1276_v39, %v1026_v38  ;;  %v1259_v47 = vld [vmem:[#allocation2 + $0x4] sm:$0xf] }
  0x25   :  { %420 = vmatpush.bf16.msra.mxu2 %v999_v18  ;;  %v960_v48 = vld [vmem:[#allocation2 + $0xc] sm:$0xf0]  ;;  %v1123_v49 = vor.u32 %v1300_v42, %v1122_v40  ;;  %v1014_v50 = vld [vmem:[#allocation2 + $0x68] sm:$0xf]  ;;  %v1273_v51 = vld [vmem:[#allocation2 + $0x70] sm:$0xf0]  ;;  %v1071_v53 = vor.u32 %v1286_v43, %v1068_v44 }
  0x26   :  { %v1110_v52 = vld [vmem:[#allocation2 + $0x128] sm:$0xf]  ;;  %v1297_v54 = vld [vmem:[#allocation2 + $0x130] sm:$0xf0]  ;;  %v1283_v55 = vld [vmem:[#allocation2 + $0xc4] sm:$0xf]  ;;  %v963_v57 = vor.u32 %v1259_v47, %v960_v48  ;;  %v1015_v58 = vor.u32 %v1273_v51, %v1014_v50 }
  0x27   :  { %396 = vmatpush.bf16.msra.mxu0 %v971_v63  ;;  %433 = vmatpush.bf16.msra.mxu3 %v1095_v27  ;;  %v1056_v56 = vld [vmem:[#allocation2 + $0xcc] sm:$0xf0]  ;;  %v1111_v59 = vor.u32 %v1297_v54, %v1110_v52  ;;  %v1270_v61 = vld [vmem:[#allocation2 + $0x58] sm:$0xf0]  ;;  %v990_v3 = vld [vmem:[#allocation2 + $0x38] sm:$0xf] }
  0x28   :  { %409 = vmatpush.bf16.msra.mxu1 %v1067_v4  ;;  %v1002_v60 = vld [vmem:[#allocation2 + $0x50] sm:$0xf]  ;;  %v1059_v62 = vor.u32 %v1283_v55, %v1056_v56  ;;  %v1294_v0 = vld [vmem:[#allocation2 + $0x118] sm:$0xf0]  ;;  %v1267_v4 = vld [vmem:[#allocation2 + $0x40] sm:$0xf0] }
  0x29   :  { %421 = vmatpush.bf16.msra.mxu2 %v987_v33  ;;  %v1098_v63 = vld [vmem:[#allocation2 + $0x110] sm:$0xf]  ;;  %v1003_v1 = vor.u32 %v1270_v61, %v1002_v60  ;;  %v1086_v5 = vld [vmem:[#allocation2 + $0xf8] sm:$0xf]  ;;  %v1291_v6 = vld [vmem:[#allocation2 + $0x100] sm:$0xf0]  ;;  %v991_v7 = vor.u32 %v1267_v4, %v990_v3 }
  0x2a   :  { %v1099_v2 = vor.u32 %v1294_v0, %v1098_v63  ;;  %v1087_v8 = vor.u32 %v1291_v6, %v1086_v5  ;;  %v978_v9 = vld [vmem:[#allocation2 + $0x20] sm:$0xf]  ;;  %v1264_v10 = vld [vmem:[#allocation2 + $0x28] sm:$0xf0]  ;;  %v966_v15 = vld [vmem:[#allocation2 + $0x8] sm:$0xf] }
  0x2b   :  { %397 = vmatpush.bf16.msra.mxu0 %v959_v16  ;;  %434 = vmatpush.bf16.msra.mxu3 %v1083_v41  ;;  %v1074_v11 = vld [vmem:[#allocation2 + $0xe0] sm:$0xf]  ;;  %v1288_v12 = vld [vmem:[#allocation2 + $0xe8] sm:$0xf0]  ;;  %v979_v13 = vor.u32 %v1264_v10, %v978_v9  ;;  %v1261_v16 = vld [vmem:[#allocation2 + $0x10] sm:$0xf0] }
  0x2c   :  { %410 = vmatpush.bf16.msra.mxu1 %v1055_v19  ;;  %v1075_v14 = vor.u32 %v1288_v12, %v1074_v11  ;;  %v1062_v17 = vld [vmem:[#allocation2 + $0xc8] sm:$0xf]  ;;  %v1285_v18 = vld [vmem:[#allocation2 + $0xd0] sm:$0xf0]  ;;  %v967_v19 = vor.u32 %v1261_v16, %v966_v15  ;;  %v1238_v26 = vld [vmem:[#allocation5 + $0xb0] sm:$0xf] }
  0x2d   :  { %422 = vmatpush.bf16.msra.mxu2 %v975_v45  ;;  %v1330_v27 = vld [vmem:[#allocation5 + $0xb4] sm:$0xf0]  ;;  %v1230_v28 = vld [vmem:[#allocation5 + $0xa0] sm:$0xf]  ;;  %v1328_v31 = vld [vmem:[#allocation5 + $0xa4] sm:$0xf0] }
  0x2e   :  { %398 = vmatmul.bf16.vlgmr.msra.gmra.mxu0 %v1486_v29  ;;  %v1239_v30 = vor.u32 %v1330_v27, %v1238_v26  ;;  %v1206_v33 = vld [vmem:[#allocation5 + $0x70] sm:$0xf]  ;;  %v1198_v36 = vld [vmem:[#allocation5 + $0x60] sm:$0xf]  ;;  %v1326_v38 = vld [vmem:[#allocation5 + $0x94] sm:$0xf0] }
  0x2f   :  { %442 = vmatpush.bf16.msrb.mxu0 %v1051_v20  ;;  %411 = vmatmul.bf16.vlgmr.msra.gmra.mxu1 %v1488_v32  ;;  %v1063_v20 = vor.u32 %v1285_v18, %v1062_v17  ;;  %v1329_v40 = vld [vmem:[#allocation5 + $0xb4] sm:$0xf]  ;;  %v1240_v41 = vld [vmem:[#allocation5 + $0xb8] sm:$0xf0]  ;;  %v1190_v42 = vld [vmem:[#allocation5 + $0x50] sm:$0xf] }
  0x30   :  { %455 = vmatpush.bf16.msrb.mxu1 %v1147_v23  ;;  %435 = vmatpush.bf16.msra.mxu3 %v1071_v53  ;;  %v1318_v43 = vld [vmem:[#allocation5 + $0x54] sm:$0xf0]  ;;  %v1243_v44 = vor.u32 %v1329_v40, %v1240_v41  ;;  %v1327_v45 = vld [vmem:[#allocation5 + $0xa4] sm:$0xf]  ;;  %v1232_v48 = vld [vmem:[#allocation5 + $0xa8] sm:$0xf0] }
  0x31   :  { %423 = vmatpush.bf16.msra.mxu2 %v963_v57  ;;  %v1324_v50 = vld [vmem:[#allocation5 + $0x84] sm:$0xf0]  ;;  %v1321_v51 = vld [vmem:[#allocation5 + $0x74] sm:$0xf]  ;;  %v1191_v52 = vor.u32 %v1318_v43, %v1190_v42  ;;  %v1235_v53 = vor.u32 %v1327_v45, %v1232_v48  ;;  %v1208_v55 = vld [vmem:[#allocation5 + $0x78] sm:$0xf0] }
  0x32   :  { %v1182_v56 = vld [vmem:[#allocation5 + $0x40] sm:$0xf]  ;;  %v1316_v57 = vld [vmem:[#allocation5 + $0x44] sm:$0xf0]  ;;  %v1211_v61 = vor.u32 %v1321_v51, %v1208_v55  ;;  %v1200_v0 = vld [vmem:[#allocation5 + $0x68] sm:$0xf0] }
  0x33   :  { %443 = vmatpush.bf16.msrb.mxu0 %v1039_v34  ;;  %v1322_v34 = vld [vmem:[#allocation5 + $0x74] sm:$0xf0]  ;;  %v1183_v63 = vor.u32 %v1316_v57, %v1182_v56  ;;  %v1192_v9 = vld [vmem:[#allocation5 + $0x58] sm:$0xf0]  ;;  %v1312_v26 = vld [vmem:[#allocation5 + $0x24] sm:$0xf0] }
  0x34   :  { %456 = vmatpush.bf16.msrb.mxu1 %v1135_v37  ;;  %436 = vmatpush.bf16.msra.mxu3 %v1059_v62  ;;  %v1207_v35 = vor.u32 %v1322_v34, %v1206_v33  ;;  %v1231_v37 = vor.u32 %v1328_v31, %v1230_v28  ;;  %v1319_v62 = vld [vmem:[#allocation5 + $0x64] sm:$0xf]  ;;  %v1314_v3 = vld [vmem:[#allocation5 + $0x34] sm:$0xf0]  ;;  %v1176_v31 = vld [vmem:[#allocation5 + $0x38] sm:$0xf0] }
  0x35   :  { %424 = vmatmul.bf16.vlgmr.msra.gmra.mxu2 %v1486_v29  ;;  %v1203_v5 = vor.u32 %v1319_v62, %v1200_v0  ;;  %v1158_v34 = vld [vmem:[#allocation5 + $0x10] sm:$0xf]  ;;  %v1309_v41 = vld [vmem:[#allocation5 + $0x14] sm:$0xf]  ;;  %v1160_v42 = vld [vmem:[#allocation5 + $0x18] sm:$0xf0] }
  0x36   :  { %635 = vmatpush.bf16.msrb.mxu2 %v1207_v35  ;;  %v1310_v35 = vld [vmem:[#allocation5 + $0x14] sm:$0xf0]  ;;  %v1163_v43 = vor.u32 %v1309_v41, %v1160_v42  ;;  %v1152_v45 = vld [vmem:[#allocation5 + $0x8] sm:$0xf0]  ;;  %vm478_vm0 = vcmask 523264   ;;  %vm743_vm1 = vcmask 48128  }
  0x37   :  { %444 = vmatpush.bf16.msrb.mxu0 %v1027_v46  ;;  %437 = vmatmul.bf16.vlgmr.msra.gmra.mxu3 %v1488_v32  ;;  %v1519_v56 = vld [vmem:[%s1579_s4 + $0x8] sm:$0xff]  ;;  %vm779_vm2 = vcmask 1045504   ;;  %vm909_vm7 = vcmask 261120   ;;  %s1436_s13 = smov [#allocation7]   ;;  %vm936_vm8 = vcmask 8192  }
  0x38   :  { %457 = vmatpush.bf16.msrb.mxu1 %v1123_v49  ;;  %652 = vmatpush.bf16.msrb.mxu3 %v1239_v30  ;;  %v1214_v49 = vld [vmem:[#allocation5 + $0x80] sm:$0xf]  ;;  %v1313_v30 = vld [vmem:[#allocation5 + $0x34] sm:$0xf]  ;;  %s943_s14 = sshll.u32 %s1436_s13, 4  ;;  %s944_s14 = int_to_ptr.vmem [resolvable:$true] %s943_s14 }
  0x39   :  { %v1215_v60 = vor.u32 %v1324_v50, %v1214_v49  ;;  %v1179_v33 = vor.u32 %v1313_v30, %v1176_v31 }
  0x3b   :  { %445 = vmatpush.bf16.msrb.mxu0 %v1015_v58  ;;  %v1325_v58 = vld [vmem:[#allocation5 + $0x94] sm:$0xf] }
  0x3c   :  { %458 = vmatpush.bf16.msrb.mxu1 %v1111_v59  ;;  %653 = vmatpush.bf16.msrb.mxu3 %v1231_v37  ;;  %v1224_v59 = vld [vmem:[#allocation5 + $0x98] sm:$0xf0]  ;;  %v1311_v37 = vld [vmem:[#allocation5 + $0x24] sm:$0xf] }
  0x3f   :  { %446 = vmatpush.bf16.msrb.mxu0 %v1003_v1  ;;  %v1227_v1 = vor.u32 %v1325_v58, %v1224_v59 }
  0x40   :  { %459 = vmatpush.bf16.msrb.mxu1 %v1099_v2  ;;  %v1174_v2 = vld [vmem:[#allocation5 + $0x30] sm:$0xf] }
  0x41   :  { %v1175_v6 = vor.u32 %v1314_v3, %v1174_v2  ;;  %v689_v2 = vld [vmem:[%s1576_s1] sm:$0x3] }
  0x43   :  { %447 = vmatpush.bf16.msrb.mxu0 %v991_v7 }
  0x44   :  { %460 = vmatpush.bf16.msrb.mxu1 %v1087_v8  ;;  %v1317_v8 = vld [vmem:[#allocation5 + $0x54] sm:$0xf] }
  0x47   :  { %448 = vmatpush.bf16.msrb.mxu0 %v979_v13  ;;  %v1195_v13 = vor.u32 %v1317_v8, %v1192_v9 }
  0x48   :  { %461 = vmatpush.bf16.msrb.mxu1 %v1075_v14 }
  0x4b   :  { %449 = vmatpush.bf16.msrb.mxu0 %v967_v19  ;;  %v1315_v19 = vld [vmem:[#allocation5 + $0x44] sm:$0xf] }
  0x4c   :  { %462 = vmatpush.bf16.msrb.mxu1 %v1063_v20  ;;  %v1184_v20 = vld [vmem:[#allocation5 + $0x48] sm:$0xf0] }
  0x4e   :  { %450 = vmatmul.bf16.vlgmr.msrb.gmra.mxu0 %v1486_v29  ;;  %v1320_v29 = vld [vmem:[#allocation5 + $0x64] sm:$0xf0] }
  0x4f   :  { %463 = vmatmul.bf16.vlgmr.msrb.gmra.mxu1 %v1488_v32  ;;  %v1222_v32 = vld [vmem:[#allocation5 + $0x90] sm:$0xf]  ;;  %v1199_v39 = vor.u32 %v1320_v29, %v1198_v36  ;;  %678 = vmatpush.bf16.msra.mxu0 %v1243_v44  ;;  %v1159_v36 = vor.u32 %v1310_v35, %v1158_v34  ;;  %v1168_v29 = vld [vmem:[#allocation5 + $0x28] sm:$0xf0]  ;;  %v1307_v44 = vld [vmem:[#allocation5 + $0x4] sm:$0xf] }
  0x50   :  { %v1223_v47 = vor.u32 %v1326_v38, %v1222_v32  ;;  %v1171_v32 = vor.u32 %v1311_v37, %v1168_v29  ;;  %v1150_v38 = vld [vmem:[#allocation5] sm:$0xf] }
  0x51   :  { %636 = vmatpush.bf16.msrb.mxu2 %v1199_v39  ;;  %v1308_v39 = vld [vmem:[#allocation5 + $0x4] sm:$0xf0] }
  0x52   :  { %654 = vmatpush.bf16.msrb.mxu3 %v1223_v47  ;;  %v1151_v40 = vor.u32 %v1308_v39, %v1150_v38 }
  0x53   :  { %679 = vmatpush.bf16.msra.mxu0 %v1235_v53 }
  0x55   :  { %637 = vmatpush.bf16.msrb.mxu2 %v1191_v52 }
  0x56   :  { %655 = vmatpush.bf16.msrb.mxu3 %v1215_v60 }
  0x57   :  { %680 = vmatpush.bf16.msra.mxu0 %v1227_v1  ;;  %v511_v1 = vperm.slane %v1519_v56, 6 }
  0x59   :  { %638 = vmatpush.bf16.msrb.mxu2 %v1183_v63 }
  0x5a   :  { %661 = vmatpush.bf16.msra.mxu3 %v1211_v61 }
  0x5d   :  { %639 = vmatpush.bf16.msrb.mxu2 %v1175_v6  ;;  %v691_v6 = vperm.slane %v689_v2, 0 }
  0x5e   :  { %662 = vmatpush.bf16.msra.mxu3 %v1203_v5 }
  0x62   :  { %663 = vmatpush.bf16.msra.mxu3 %v1195_v13 }
  0xab   :  { %v399_v21 = vpop.f32.mrf.mxu0 }
  0xac   :  { %v412_v22 = vpop.f32.mrf.mxu1 }
  0xad   :  { %v1496_v23 = vadd.f32 %v412_v22, %v399_v21  ;;  %v1323_v21 = vld [vmem:[#allocation5 + $0x84] sm:$0xf]  ;;  %v1187_v22 = vor.u32 %v1315_v19, %v1184_v20 }
  0xaf   :  { %664 = vmatpush.bf16.msra.mxu3 %v1187_v22 }
  0xb3   :  { %v401_v24 = vpop.f32.mrf.mxu0  ;;  %665 = vmatpush.bf16.msra.mxu3 %v1179_v33 }
  0xb4   :  { %v414_v25 = vpop.f32.mrf.mxu1  ;;  %v1216_v24 = vld [vmem:[#allocation5 + $0x88] sm:$0xf0] }
  0xb5   :  { %v1166_v25 = vld [vmem:[#allocation5 + $0x20] sm:$0xf]  ;;  %v1219_v27 = vor.u32 %v1323_v21, %v1216_v24 }
  0xb6   :  { %v1167_v28 = vor.u32 %v1312_v26, %v1166_v25 }
  0xb7   :  { %681 = vmatpush.bf16.msra.mxu0 %v1219_v27  ;;  %666 = vmatpush.bf16.msra.mxu3 %v1171_v32 }
  0xb8   :  { %v425_v46 = vpop.f32.mrf.mxu2  ;;  %640 = vmatpush.bf16.msrb.mxu2 %v1167_v28 }
  0xba   :  { %v438_v54 = vpop.f32.mrf.mxu3 }
  0xbb   :  { %v439_v15 = vadd.f32 %v438_v54, %v425_v46  ;;  %667 = vmatpush.bf16.msra.mxu3 %v1163_v43  ;;  %v1155_v46 = vor.u32 %v1307_v44, %v1152_v45 }
  0xbc   :  { %641 = vmatpush.bf16.msrb.mxu2 %v1159_v36 }
  0xbd   :  { %v470_v18 = vmax.f32 %v439_v15, 0.0  ;;  %1339 = vtanh.f32 %v439_v15 }
  0xbe   :  { %1341 = vtanh.f32 %v1496_v23  ;;  %v1513_v23 = vld [vmem:[%s1579_s4] sm:$0xff] }
  0xbf   :  { %668 = vmatpush.bf16.msra.mxu3 %v1155_v46  ;;  %718 = vmatpush.xpose.msra.mxu1 %v1513_v23  ;;  %v510_v60 = vperm.slane %v1513_v23, 6  ;;  %v846_v46 = vld [vmem:[%s1580_s5 + $0x30] sm:$0xff] }
  0xc0   :  { %v427_v4 = vpop.f32.mrf.mxu2  ;;  %642 = vmatpush.bf16.msrb.mxu2 %v1151_v40  ;;  %877 = vmatpush.xpose.msrb.mxu0 %v846_v46 }
  0xc2   :  { %v440_v7 = vpop.f32.mrf.mxu3 }
  0xc3   :  { %v1340_v47 = vpop.eup %1339  ;;  %1248 = vmatpush.msk.msrb.mxu1 %vm779_vm2, %v1513_v23 }
  0xc4   :  { %v1342_v52 = vpop.eup %1341  ;;  %1246 = vmatpush.xpose.msk.msra.mxu2 %vm478_vm0, %v1519_v56 }
  0xcb   :  { %v451_v10 = vpop.f32.mrf.mxu0 }
  0xcc   :  { %v464_v11 = vpop.f32.mrf.mxu1 }
  0xcd   :  { %v465_v12 = vadd.f32 %v464_v11, %v451_v10  ;;  %v692_v10 = vperm.slane %v689_v2, 1 }
  0xcf   :  { %v471_v14 = vmax.f32 %v465_v12, 0.0 }
  0xd1   :  { %476 = vrot.lane.b32.xlu0 %v471_v14, %s1435_s0 }
  0xd3   :  { %v453_v16 = vpop.f32.mrf.mxu0 }
  0xd4   :  { %v466_v17 = vpop.f32.mrf.mxu1 }
  0xd9   :  { %474 = vrot.lane.b32.xlu0 %v470_v18, %s1435_s0  ;;  %s945_s0 = sshll.u32 %s1582_s7, 4  ;;  %s946_s0 = int_to_ptr.hbm [resolvable:$true] %s945_s0 }
 0x143   :  { %v477_v48 = vpop.permute.xlu0 %476 }
 0x144   :  { %v1498_v49 = vmul.f32 %v1340_v47, %v477_v48  ;;  %v844_v47 = vld [vmem:[%s1580_s5 + $0x20] sm:$0xff] }
 0x145   :  { %878 = vmatpush.xpose.msrb.mxu0 %v844_v47 }
 0x146   :  { %v485_v50 = vpack.c.bf16 %v1498_v49, %v1498_v49 }
 0x148   :  { %1244 = vmatmul.msk.bf16.vlgmr.msrb.gmra.mxu3 %vm478_vm0, %v485_v50  ;;  %1245 = vmatmul.msk.bf16.vlgmr.msra.gmra.mxu0 %vm478_vm0, %v485_v50  ;;  %v842_v50 = vld [vmem:[%s1580_s5 + $0x10] sm:$0xff] }
 0x149   :  { %879 = vmatpush.xpose.msrb.mxu0 %v842_v50 }
 0x14b   :  { %v475_v51 = vpop.permute.xlu0 %474 }
 0x14c   :  { %v479_v53 = vsel %vm478_vm0, %v475_v51, %v477_v48  ;;  %v847_v48 = vld [vmem:[%s1580_s5 + $0x38] sm:$0xff]  ;;  %v845_v51 = vld [vmem:[%s1580_s5 + $0x28] sm:$0xff] }
 0x14d   :  { %v1506_v54 = vmul.f32 %v1342_v52, %v479_v53  ;;  %1252 = vmatpush.xpose.msk.msrb.mxu3 %vm478_vm0, %v847_v48  ;;  %v840_v52 = vld [vmem:[%s1580_s5] sm:$0xff]  ;;  %v843_v53 = vld [vmem:[%s1580_s5 + $0x18] sm:$0xff] }
 0x14e   :  { %880 = vmatpush.xpose.msrb.mxu0 %v840_v52 }
 0x14f   :  { %v484_v55 = vpack.c.bf16 %v1506_v54, %v1506_v54 }
 0x151   :  { %643 = vmatmul.bf16.vlgmr.msrb.gmra.mxu2 %v484_v55  ;;  %1253 = vmatpush.xpose.msk.msrb.mxu3 %vm478_vm0, %v845_v51 }
 0x152   :  { %1250 = vmatpush.msk.msrb.mxu2 %vm779_vm2, %v1519_v56 }
 0x155   :  { %1254 = vmatpush.xpose.msk.msrb.mxu3 %vm478_vm0, %v843_v53 }
 0x158   :  { %669 = vmatmul.bf16.vlgmr.msra.gmra.mxu3 %v484_v55  ;;  %v841_v55 = vld [vmem:[%s1580_s5 + $0x8] sm:$0xff] }
 0x159   :  { %1255 = vmatpush.xpose.msk.msrb.mxu3 %vm478_vm0, %v841_v55 }
 0x1c5   :  { %v683_v57 = vpop.f32.mrf.mxu0 }
 0x1cb   :  { %v657_v58 = vpop.f32.mrf.mxu3 }
 0x1cd   :  { %v685_v59 = vpop.f32.mrf.mxu0 }
 0x1d3   :  { %v659_v61 = vpop.f32.mrf.mxu3 }
 0x1d4   :  { %v644_v62 = vpop.f32.mrf.mxu2 }
 0x1d5   :  { %v645_v63 = vadd.f32 %v644_v62, %v510_v60 }
 0x1d7   :  { %v658_v0 = vadd.f32 %v657_v58, %v645_v63 }
 0x1d9   :  { %1343 = vtanh.f32 %v658_v0 }
 0x1db   :  { %v670_v3 = vpop.f32.mrf.mxu3 }
 0x1dc   :  { %v671_v4 = vadd.f32 %v670_v3, %v511_v1  ;;  %v646_v5 = vpop.f32.mrf.mxu2 }
 0x1de   :  { %v684_v7 = vadd.f32 %v683_v57, %v671_v4 }
 0x1df   :  { %v1344_v8 = vpop.eup %1343 }
 0x1e0   :  { %1345 = vtanh.f32 %v684_v7  ;;  %v695_v9 = vmul.f32 %v1344_v8, %v691_v6 }
 0x1e2   :  { %719 = vmatmul.f32.vlgmr.msra.gmra.mxu1 %v695_v9 }
 0x1e3   :  { %v672_v11 = vpop.f32.mrf.mxu3 }
 0x1e6   :  { %v1346_v12 = vpop.eup %1345 }
 0x1e7   :  { %v696_v13 = vmul.f32 %v1346_v12, %v692_v10 }
 0x1e9   :  { %1247 = vmatmul.msk.f32.vlgmr.msra.gmra.mxu2 %vm478_vm0, %v696_v13 }
 0x25f   :  { %v720_v14 = vpop.f32.mrf.mxu1 }
 0x26c   :  { %v740_v15 = vpop.f32.mrf.mxu2 }
 0x26d   :  { %v741_v16 = vadd.f32 %v740_v15, %v720_v14  ;;  %v907_v15 = vrot.slane %v1519_v56, 7 }
 0x26f   :  { %v744_v17 = vsel %vm743_vm1, %v741_v16, -inf }
 0x270   :  { %v745_v18 = vrot.slane %v744_v17, 4 }
 0x272   :  { %v746_v19 = vmax.f32 %v744_v17, %v745_v18 }
 0x274   :  { %v747_v20 = vrot.slane %v746_v19, 2 }
 0x276   :  { %v748_v21 = vmax.f32 %v746_v19, %v747_v20 }
 0x278   :  { %v749_v22 = vrot.slane %v748_v21, 1 }
 0x27a   :  { %v750_v24 = vmax.f32 %v748_v21, %v749_v22 }
 0x27c   :  { %v751_v25 = vsub.f32 %v741_v16, %v750_v24 }
 0x27e   :  { %v752_v26 = vmul.f32 1.442695, %v751_v25 }
 0x280   :  { %1347 = vpow2.f32 %v752_v26 }
 0x286   :  { %v1348_v27 = vpop.eup %1347 }
 0x287   :  { %v754_v28 = vsel %vm743_vm1, %v1348_v27, 0.0 }
 0x288   :  { %v755_v30 = vrot.slane %v754_v28, 4 }
 0x28a   :  { %v756_v31 = vadd.f32 %v755_v30, %v754_v28 }
 0x28c   :  { %v757_v33 = vrot.slane %v756_v31, 2 }
 0x28e   :  { %v758_v34 = vadd.f32 %v757_v33, %v756_v31 }
 0x290   :  { %v759_v35 = vrot.slane %v758_v34, 1 }
 0x292   :  { %v760_v36 = vadd.f32 %v759_v35, %v758_v34 }
 0x294   :  { %1349 = vrcp.f32 %v760_v36  ;;  %v772_v38 = vand.u32 2147483648, %v760_v36  ;;  %v770_v40 = vand.u32 2147483647, %v760_v36  ;;  %vm766_vm4 = vweird.f32 %v760_v36 }
 0x296   :  { %v773_v42 = vor.u32 1.1754944e-38, %v772_v38  ;;  %vm771_vm6 = vcmp.eq.f32.partialorder %v770_v40, 8.507059e+37 }
 0x29a   :  { %v1350_v37 = vpop.eup %1349 }
 0x29b   :  { %v762_v29 = vmul.f32 %v1350_v37, %v760_v36  ;;  %vm767_vm3 = vweird.f32 %v1350_v37 }
 0x29c   :  { %vm768_vm5 = vmor %vm766_vm4, %vm767_vm3 }
 0x29d   :  { %v763_v32 = vsub.f32 1.0, %v762_v29 }
 0x29f   :  { %v764_v39 = vmul.f32 %v1350_v37, %v763_v32 }
 0x2a1   :  { %v765_v41 = vadd.f32 %v1350_v37, %v764_v39 }
 0x2a3   :  { %v769_v43 = vsel %vm768_vm5, %v1350_v37, %v765_v41 }
 0x2a4   :  { %v774_v44 = vsel %vm771_vm6, %v773_v42, %v769_v43 }
 0x2a5   :  { %v775_v45 = vmul.f32 %v1348_v27, %v774_v44 }
 0x2a7   :  { %1249 = vmatmul.msk.f32.vlgmr.msrb.gmra.mxu1 %vm743_vm1, %v775_v45  ;;  %1251 = vmatmul.msk.f32.vlgmr.msrb.gmra.mxu2 %vm743_vm1, %v775_v45 }
 0x324   :  { %v802_v57 = vpop.f32.mrf.mxu1 }
 0x325   :  { %v825_v58 = vmul.f32 %v802_v57, %v1506_v54  ;;  %v906_v54 = vld [vmem:[%s1581_s6] sm:$0x3] }
 0x326   :  { %1257 = vmatpush.xpose.msk.msra.mxu1 %vm909_vm7, %v906_v54 }
 0x327   :  { %v827_v59 = vrot.slane %v825_v58, 4 }
 0x329   :  { %v828_v60 = vadd.f32 %v827_v59, %v825_v58 }
 0x32a   :  { %v822_v61 = vpop.f32.mrf.mxu2 }
 0x32b   :  { %v829_v62 = vrot.slane %v828_v60, 2  ;;  %v826_v63 = vmul.f32 %v822_v61, %v1498_v49  ;;  %v848_v49 = vrot.slane %v1513_v23, 7 }
 0x32d   :  { %v830_v0 = vadd.f32 %v829_v62, %v828_v60  ;;  %v833_v1 = vsel %vm478_vm0, %v826_v63, 0.0 }
 0x32e   :  { %v834_v2 = vrot.slane %v833_v1, 4 }
 0x32f   :  { %v831_v3 = vrot.slane %v830_v0, 1 }
 0x330   :  { %v835_v4 = vadd.f32 %v834_v2, %v833_v1 }
 0x331   :  { %v832_v5 = vadd.f32 %v831_v3, %v830_v0 }
 0x332   :  { %v836_v6 = vrot.slane %v835_v4, 2 }
 0x333   :  { %881 = vmatmul.f32.vlgmr.msrb.gmra.mxu0 %v832_v5 }
 0x334   :  { %v837_v7 = vadd.f32 %v836_v6, %v835_v4 }
 0x336   :  { %v838_v8 = vrot.slane %v837_v7, 1 }
 0x338   :  { %v839_v9 = vadd.f32 %v838_v8, %v837_v7 }
 0x33a   :  { %1256 = vmatmul.msk.f32.vlgmr.msrb.gmra.mxu3 %vm478_vm0, %v839_v9 }
 0x3b0   :  { %v882_v10 = vpop.f32.mrf.mxu0 }
 0x3b1   :  { %v883_v11 = vadd.f32 %v882_v10, %v848_v49 }
 0x3bd   :  { %v902_v12 = vpop.f32.mrf.mxu3 }
 0x3be   :  { %v903_v13 = vadd.f32 %v902_v12, %v883_v11 }
 0x3c0   :  { %v905_v14 = vmax.f32 %v903_v13, 0.0 }
 0x3c2   :  { %1258 = vmatmul.msk.f32.vlgmr.msra.gmra.mxu1 %vm909_vm7, %v905_v14 }
 0x43f   :  { %v933_v16 = vpop.f32.mrf.mxu1 }
 0x440   :  { %v934_v17 = vadd.f32 %v933_v16, %v907_v15 }
 0x442   :  { %937 = vst.msk [vmem:[#allocation7] sm:$0x1] %vm936_vm8, %v934_v17 }
 0x443   :  { %948 = dma.vmem_to_hbm [thread:$0]  %s944_s14, 16, %s946_s0, [#allocation4]  }
 0x444   :  { %1427 = dma.done.wait [#allocation4], 16  }
 0x445   :  { %1428 = vsyncadd [#allocation4], 4294967280 }
 0x446   :  { %953 = vsyncpa [#allocation3], 1 }
 0x447   :  { %954 = vsyncpa [#allocation6], 1 }
 0x448   :  { %955 = vsyncpa [#allocation4], 1 }

</bundles_post_ra>
